<compile_context>
chip_gen: v7x
topology: tpu7x:2x2x1
jax: 0.10.0
libtpu: 0.0.40
codegen_flags: <defaults>
</compile_context>

<pallas_src>
import math

import jax
import jax.numpy as jnp
from jax.experimental import pallas as pl
from jax.experimental.pallas import tpu as pltpu

_ROW_TILE = 1024            # max kernel rows per grid step
_MAX_BLOCK_BYTES = 2 << 20  # ~2 MiB f32 per (TL, W) block -> VMEM-safe everywhere
_MAX_PACK_LANES = 1024      # cap on lane-dense packing width

try:
    _TRACER_TYPES = (jax.core.Tracer,)
except AttributeError:  # pragma: no cover
    _TRACER_TYPES = ()


def _round_up(a: int, b: int) -> int:
    return ((a + b - 1) // b) * b


def _rel_pos_enc_kernel(tab_ref, c_ref, o_ref):
    """o[r, l] = sin(tab[r, l] - tile_id * c[l]).

    tab (TL, W) is the tile-0 angle table  b[l] - r * a[l]  and c (1, W) is the
    per-tile angle decrement  TL * a[l], both precomputed in the wrapper with
        a[l] = K * inv_freq[l % D]
        b[l] = (T - 1 - l // D) * inv_freq[l % D] + ((l % D) % 2) * pi/2
    so the body is one broadcast subtract plus one sin per element
    (cos(x) == sin(x + pi/2) folds the even/odd columns into a single sin).
    """
    shift = pl.program_id(0).astype(jnp.float32) * c_ref[...]   # (1, W), cheap
    o_ref[...] = jnp.sin(tab_ref[...] - shift).astype(o_ref.dtype)


def rel_positional_encoding(x: jax.Array, d_model: int) -> jax.Array:
    """Equivalent of RelPositionalEncoding(d_model).forward(x).

    Args:
      x: (B, T, C) array; only its T (seq length) and dtype matter, exactly
         like the PyTorch module.
    Returns:
      pos_emb of shape (1, 2*T - 1, d_model), dtype = x.dtype.
    """
    _, T, _ = x.shape
    D = d_model
    assert D % 2 == 0, "d_model must be even (sin/cos column pairing)"
    L = 2 * T - 1

    # Lane-dense packing: choose kernel lane width W as a multiple of both D
    # and 128 so every store is a full-width (unmasked) vst; K = W // D logical
    # rows are packed per kernel row.  D % 128 == 0 needs no packing at all.
    if D % 128 == 0:
        K, W = 1, D
    else:
        w_packed = math.lcm(D, 128)
        if w_packed <= _MAX_PACK_LANES:
            K, W = w_packed // D, w_packed
        else:
            K, W = 1, D            # fallback: full-dim (masked) stores, no copies

    rows = L if K == 1 else pl.cdiv(L, K)      # kernel rows to produce

    # Row-tile selection: big tiles for store efficiency (v5e), capped so one
    # block stays <= ~2 MiB of VMEM, and split so there are >= 2 grid steps
    # whenever there is enough work (v7x megacore).
    tl_vmem = max(16, (_MAX_BLOCK_BYTES // (4 * W)) // 16 * 16)
    TL = min(_ROW_TILE, tl_vmem)
    if rows > 64:
        TL = min(TL, _round_up(pl.cdiv(rows, 2), 16))
    else:
        TL = min(TL, _round_up(rows, 16))
    TL = max(TL, 16)
    num_tiles = pl.cdiv(rows, TL)

    # Per-lane constants and the tile-0 angle table (tiny, computed once per
    # (T, d_model, dtype); the class caches the final result anyway).
    lane = jnp.arange(W, dtype=jnp.int32)
    col = lane % D
    lane_div = (lane // D).astype(jnp.float32)
    inv_freq = jnp.exp((col // 2).astype(jnp.float32)
                       * jnp.float32(-2.0 * math.log(10000.0) / D))
    phase = (col % 2).astype(jnp.float32) * jnp.float32(math.pi / 2.0)
    a = inv_freq * jnp.float32(K)                                  # (W,)
    b = (jnp.float32(T - 1) - lane_div) * inv_freq + phase         # (W,)
    row = jnp.arange(TL, dtype=jnp.float32)[:, None]               # (TL, 1)
    tab = b[None, :] - row * a[None, :]                            # (TL, W)
    c = (jnp.float32(TL) * a)[None, :]                             # (1, W)

    out_flat = pl.pallas_call(
        _rel_pos_enc_kernel,
        grid=(num_tiles,),
        out_shape=jax.ShapeDtypeStruct((rows, W), x.dtype),
        in_specs=[
            pl.BlockSpec((TL, W), lambda i: (0, 0)),   # tile-0 angle table
            pl.BlockSpec((1, W), lambda i: (0, 0)),    # per-tile decrement
        ],
        out_specs=pl.BlockSpec((TL, W), lambda i: (i, 0)),
        compiler_params=pltpu.CompilerParams(
            dimension_semantics=("parallel",)),
    )(tab, c)

    if K == 1:
        return out_flat[None]                          # exact (1, L, D), no copy
    out = out_flat.reshape(rows * K, D)                # contiguous un-pack
    if rows * K != L:
        out = out[:L]                                  # < K rows of slack only
    return out[None]


class RelPositionalEncoding:
    """JAX/Pallas port of the PyTorch module; caches the table per (T, dtype)."""

    def __init__(self, d_model: int = 512, max_len: int = 5000):
        del max_len  # output is independent of max_len (matches PyTorch slice)
        self.d_model = d_model
        self._cache = {}

    def __call__(self, x: jax.Array) -> jax.Array:
        key = (x.shape[1], jnp.dtype(x.dtype))
        pe = self._cache.get(key)
        if pe is not None:
            return pe
        pe = rel_positional_encoding(x, self.d_model)
        if not isinstance(pe, _TRACER_TYPES):   # don't cache under jit tracing
            self._cache[key] = pe
        return pe


def _reference(x: jax.Array, d_model: int) -> jax.Array:
    """Pure-JAX reference reproducing the PyTorch extend_pe + slice path."""
    _, T, _ = x.shape
    pos = jnp.arange(T, dtype=jnp.float32)[:, None]
    div = jnp.exp(jnp.arange(0, d_model, 2, dtype=jnp.float32)
                  * (-math.log(10000.0) / d_model))
    pe_pos = jnp.zeros((T, d_model), jnp.float32)
    pe_neg = jnp.zeros((T, d_model), jnp.float32)
    pe_pos = pe_pos.at[:, 0::2].set(jnp.sin(pos * div))
    pe_pos = pe_pos.at[:, 1::2].set(jnp.cos(pos * div))
    pe_neg = pe_neg.at[:, 0::2].set(jnp.sin(-pos * div))
    pe_neg = pe_neg.at[:, 1::2].set(jnp.cos(-pos * div))
    pe = jnp.concatenate([jnp.flip(pe_pos, 0)[None], pe_neg[1:][None]], axis=1)
    center = pe.shape[1] // 2
    return pe[:, center - T + 1: center + T].astype(x.dtype)


if __name__ == "__main__":
    # Primary small-shape check (matches the module's B x T x C input).
    # d_model=32 -> lane-packed path (K=4, W=128) with a tiny trailing overhang.
    d_model = 32
    B, T = 2, 8
    key = jax.random.PRNGKey(0)
    x = jax.random.normal(key, (B, T, d_model), dtype=jnp.float32)

    module = RelPositionalEncoding(d_model)
    pos_emb = jax.block_until_ready(module(x))
    ref = _reference(x, d_model)
    assert pos_emb.shape == (1, 2 * T - 1, d_model), pos_emb.shape
    assert jnp.allclose(pos_emb, ref, atol=1e-5, rtol=1e-5), "mismatch vs reference"

    # Second call hits the shape-keyed cache (steady-state cost ~0).
    pos_emb2 = module(x)
    assert jnp.allclose(pos_emb2, ref, atol=1e-5, rtol=1e-5)

    # Multi-tile, lane-packed path (K=2, grid=2).  Looser tolerance: large
    # angles (~T) make f32 sin/cos argument rounding visible in both impls.
    T2, D2 = 600, 64
    x2 = jnp.zeros((1, T2, D2), jnp.float32)
    out2 = jax.block_until_ready(rel_positional_encoding(x2, D2))
    ref2 = _reference(x2, D2)
    assert out2.shape == (1, 2 * T2 - 1, D2)
    assert jnp.allclose(out2, ref2, atol=1e-3, rtol=1e-3)

    # Exact-shape lane-dense path (K=1, D multiple of 128, 2 grid tiles,
    # no padding and no post-kernel slice copy).
    T3, D3 = 70, 256
    x3 = jnp.zeros((1, T3, D3), jnp.float32)
    out3 = jax.block_until_ready(rel_positional_encoding(x3, D3))
    ref3 = _reference(x3, D3)
    assert out3.shape == (1, 2 * T3 - 1, D3)
    assert jnp.allclose(out3, ref3, atol=1e-3, rtol=1e-3)

    # Fallback path (D not a multiple of 128 and lcm(D,128) too wide to pack):
    # exact (L, D) output with full-dim (masked) stores, no extra copies.
    T4, D4 = 20, 144
    x4 = jnp.zeros((1, T4, D4), jnp.float32)
    out4 = jax.block_until_ready(rel_positional_encoding(x4, D4))
    ref4 = _reference(x4, D4)
    assert out4.shape == (1, 2 * T4 - 1, D4)
    assert jnp.allclose(out4, ref4, atol=1e-4, rtol=1e-4)

    print("KERNEL_OK")
</pallas_src>

<mosaic_0001>
module attributes {stable_mosaic.version = 11 : i64} {
  func.func @_rel_pos_enc_kernel(%arg0: i32, %arg1: memref<16x128xf32, #tpu.memory_space<vmem>>, %arg2: memref<1x128xf32, #tpu.memory_space<vmem>>, %arg3: memref<16x128xf32, #tpu.memory_space<vmem>>) attributes {dimension_semantics = [#tpu.dimension_semantics<parallel>], iteration_bounds = array<i64: 1>, scalar_prefetch = 0 : i64, scratch_operands = 0 : i64, tpu.core_type = #tpu.core_type<tc>, window_params = [{pipeline_mode = #tpu.pipeline_mode<synchronous>, transform_indices = @transform_0, window_bounds = array<i64: 16, 128>}, {pipeline_mode = #tpu.pipeline_mode<synchronous>, transform_indices = @transform_1, window_bounds = array<i64: 1, 128>}, {transform_indices = @transform_2, window_bounds = array<i64: 16, 128>}]} {
    %0 = arith.sitofp %arg0 : i32 to f32
    %c0 = arith.constant 0 : index
    %c0_0 = arith.constant 0 : index
    %1 = vector.load %arg2[%c0, %c0_0] : memref<1x128xf32, #tpu.memory_space<vmem>>, vector<1x128xf32>
    %2 = vector.broadcast %0 : f32 to vector<1x128xf32>
    %3 = arith.mulf %2, %1 : vector<1x128xf32>
    %c0_1 = arith.constant 0 : index
    %c0_2 = arith.constant 0 : index
    %4 = vector.load %arg1[%c0_1, %c0_2] : memref<16x128xf32, #tpu.memory_space<vmem>>, vector<16x128xf32>
    %5 = vector.broadcast %3 : vector<1x128xf32> to vector<16x128xf32>
    %6 = arith.subf %4, %5 : vector<16x128xf32>
    %7 = math.sin %6 : vector<16x128xf32>
    %c0_3 = arith.constant 0 : index
    %c0_4 = arith.constant 0 : index
    %8 = vector.load %arg3[%c0_3, %c0_4] : memref<16x128xf32, #tpu.memory_space<vmem>>, vector<16x128xf32>
    tpu.vector_store %arg3[%c0_3, %c0_4], %7 {strides = array<i32>} : memref<16x128xf32, #tpu.memory_space<vmem>>, vector<16x128xf32>,
    return
  }
  func.func @transform_0(%arg0: i32) -> (i32, i32) {
    %c0_i32 = arith.constant 0 : i32
    %c0_i32_0 = arith.constant 0 : i32
    %c0_i32_1 = arith.constant 0 : i32
    return %c0_i32, %c0_i32_0 : i32, i32
  }
  func.func @transform_1(%arg0: i32) -> (i32, i32) {
    %c0_i32 = arith.constant 0 : i32
    %c0_i32_0 = arith.constant 0 : i32
    %c0_i32_1 = arith.constant 0 : i32
    return %c0_i32, %c0_i32_0 : i32, i32
  }
  func.func @transform_2(%arg0: i32) -> (i32, i32) {
    %c0_i32 = arith.constant 0 : i32
    %c0_i32_0 = arith.constant 0 : i32
    return %arg0, %c0_i32 : i32, i32
  }
}

</mosaic_0001>

<bundles_post_ra>
// kernel: tpu_custom_call.1
= control target key start
LH: loop header
LB: loop body
LE: loop exit
PB: predicated region body
PF: predicated region fallthrough
CT: control target
= control target key end

     0   :  { %7 = vsyncpa [#allocation3], 0  ;;  %s475_s0 = inlined_call_operand.hbm [shape: f32[16,128], index: 0, kind: input, shape index: {}]   ;;  %s476_s1 = inlined_call_operand.vmem [shape: f32[1,128], index: 1, kind: input, shape index: {}]   ;;  %s477_s2 = inlined_call_operand.hbm [shape: f32[4,128], index: 2, kind: output, shape index: {}]  }
   0x1   :  { %8 = vsyncpa [#allocation4], 0  ;;  %s351_s9 = smov [#allocation2]   ;;  %s303_s13 = scalar_lea.hbm %s475_s0, 256 }
   0x2   :  { %s14_s10 = sshll.u32 %s351_s9, 4  ;;  %p304_p0 = scmp.ne.s32.totalorder %s475_s0, %s303_s13  ;;  %s15_s10 = int_to_ptr.vmem [resolvable:$true] %s14_s10 }
   0x3   :  { %p307_p1 = scmp.lt.u32.totalorder %s303_s13, %s475_s0 }
   0x5   :  { %p309_p2 = pnand %p307_p1, %p304_p0 }
   0x7   :  { %312 = shalt.err (!%p309_p2)
}
   0x8   :  { %s313_s18 = scalar_lea.vmem %s15_s10, 256  ;;  %p318_p4 = scmp.lt.s32.totalorder %s15_s10, %s15_s10 }
   0x9   :  { %p314_p3 = scmp.ne.s32.totalorder %s15_s10, %s313_s18  ;;  %p319_p5 = scmp.lt.s32.totalorder %s313_s18, %s313_s18 }
   0xb   :  { %p320_p6 = por %p319_p5, %p318_p4 }
   0xd   :  { %p321_p7 = pnand %p320_p6, %p314_p3 }
   0xf   :  { %324 = shalt.err (!%p321_p7)
}
  0x10   :  { %s352_s19 = smov 128   ;;  %s353_s20 = smov 8  }
  0x11   :  { %20 = dma.hbm_to_vmem [thread:$0]  %s475_s0, 256, %s15_s10, [#allocation3], %s352_s19, %s352_s19, %s353_s20  }
  0x12   :  { %347 = dma.done.wait [#allocation3], 256  }
  0x13   :  { %348 = vsyncadd [#allocation3], 4294967040  ;;  %v33_v0 = vlaneseq  ;;  %v27_v3 = vld [vmem:[%s476_s1] sm:$0x1]  ;;  %v31_v6 = vld [vmem:[#allocation2 + $0x8] sm:$0xff] }
  0x14   :  { %v29_v4 = vmul.f32 0.0, %v27_v3  ;;  %v30_v5 = vld [vmem:[#allocation2] sm:$0xff]  ;;  %v354_v32 = vmov 683565275   ;;  %v355_v34 = vmov 2475754826  }
  0x15   :  { %v34_v1 = vshrl.u32 %v33_v0, 7  ;;  %v356_v36 = vmov 2131351028   ;;  %v357_v38 = vmov 2102212464  }
  0x16   :  { %v358_v40 = vmov 920167782   ;;  %v359_v48 = vmov 1326507024  }
  0x17   :  { %v35_v2 = vsub.s32 0, %v34_v1 }
  0x19   :  { %v36_v7 = vrot.slane %v29_v4, %v35_v2 }
  0x1b   :  { %v393_v8 = vsub.f32 %v30_v5, %v36_v7  ;;  %v395_v9 = vsub.f32 %v31_v6, %v36_v7 }
  0x1d   :  { %v40_v10 = vand.u32 2147483647, %v393_v8  ;;  %v43_v11 = vand.u32 2139095040, %v393_v8  ;;  %v144_v12 = vand.u32 2147483647, %v395_v9  ;;  %v147_v13 = vand.u32 2139095040, %v395_v9 }
  0x1e   :  { %vm42_vm14 = vcmp.lt.s32.totalorder %v393_v8, 0 }
  0x1f   :  { %v44_v14 = vshrl.u32 %v43_v11, 23  ;;  %v47_v15 = vand.u32 8388607, %v40_v10  ;;  %v148_v16 = vshrl.u32 %v147_v13, 23  ;;  %v151_v17 = vand.u32 8388607, %v144_v12 }
  0x20   :  { %vm41_vm15 = vcmp.le.f32.partialorder %v40_v10, 0.7853982 }
  0x21   :  { %v267_v18 = vadd.s32 4294967169, %v44_v14  ;;  %v271_v19 = vadd.s32 4294967169, %v148_v16  ;;  %v48_v21 = vor.u32 8388608, %v47_v15  ;;  %v152_v22 = vor.u32 8388608, %v151_v17 }
  0x23   :  { %v50_v20 = vadd.s32 1, %v267_v18  ;;  %v154_v23 = vadd.s32 1, %v271_v19  ;;  %v405_v28 = vshll.u32 %v48_v21, 8  ;;  %v407_v30 = vshll.u32 %v152_v22, 8 }
  0x25   :  { %vm51_vm0 = vcmp.gt.s32.totalorder %v50_v20, 0  ;;  %vm155_vm1 = vcmp.gt.s32.totalorder %v154_v23, 0 }
  0x26   :  { %v52_v24 = vsel %vm51_vm0, %v50_v20, 0  ;;  %v156_v27 = vsel %vm155_vm1, %v154_v23, 0  ;;  %vm146_vm0 = vcmp.lt.s32.totalorder %v395_v9, 0  ;;  %vm145_vm1 = vcmp.le.f32.partialorder %v144_v12, 0.7853982 }
  0x27   :  { %v53_v25 = vshrl.u32 %v52_v24, 5  ;;  %v54_v26 = vand.u32 31, %v52_v24  ;;  %v158_v29 = vand.u32 31, %v156_v27  ;;  %v409_v42 = vshrl.u32 %v156_v27, 5 }
  0x29   :  { %v55_v31 = vsub.s32 32, %v54_v26  ;;  %v57_v33 = vshll.u32 %v354_v32, %v54_v26  ;;  %v60_v35 = vshll.u32 %v355_v34, %v54_v26  ;;  %v63_v37 = vshll.u32 %v356_v36, %v54_v26 }
  0x2a   :  { %v66_v39 = vshll.u32 %v357_v38, %v54_v26  ;;  %v69_v41 = vshll.u32 %v358_v40, %v54_v26  ;;  %vm72_vm2 = vcmp.lt.s32.totalorder %v53_v25, 1  ;;  %vm73_vm3 = vcmp.lt.s32.totalorder %v53_v25, 2 }
  0x2b   :  { %v56_v43 = vshrl.u32 %v354_v32, %v55_v31  ;;  %v58_v44 = vshrl.u32 %v355_v34, %v55_v31  ;;  %v61_v45 = vshrl.u32 %v356_v36, %v55_v31  ;;  %v64_v46 = vshrl.u32 %v357_v38, %v55_v31 }
  0x2c   :  { %v67_v47 = vshrl.u32 %v358_v40, %v55_v31  ;;  %v70_v49 = vshrl.u32 %v359_v48, %v55_v31  ;;  %vm75_vm4 = vcmp.lt.s32.totalorder %v53_v25, 4  ;;  %v159_v53 = vsub.s32 32, %v158_v29 }
  0x2d   :  { %v59_v50 = vor.u32 %v58_v44, %v57_v33  ;;  %v62_v51 = vor.u32 %v61_v45, %v60_v35  ;;  %v65_v52 = vor.u32 %v64_v46, %v63_v37  ;;  %vm74_vm5 = vcmp.lt.s32.totalorder %v53_v25, 3 }
  0x2e   :  { %v68_v54 = vor.u32 %v67_v47, %v66_v39  ;;  %v71_v55 = vor.u32 %v70_v49, %v69_v41  ;;  %v161_v56 = vshll.u32 %v354_v32, %v158_v29  ;;  %v164_v0 = vshll.u32 %v355_v34, %v158_v29 }
  0x2f   :  { %v76_v57 = vsel %vm72_vm2, %v56_v43, %v59_v50  ;;  %v77_v58 = vsel %vm75_vm4, %v65_v52, 2102212464  ;;  %v80_v59 = vsel %vm72_vm2, %v59_v50, %v62_v51  ;;  %v84_v60 = vsel %vm72_vm2, %v62_v51, %v65_v52 }
  0x30   :  { %v78_v61 = vsel %vm74_vm5, %v62_v51, %v77_v58  ;;  %v81_v62 = vsel %vm75_vm4, %v68_v54, 920167782  ;;  %v85_v63 = vsel %vm75_vm4, %v71_v55, 1326507024  ;;  %v160_v3 = vshrl.u32 %v354_v32, %v159_v53 }
  0x31   :  { %v82_v1 = vsel %vm74_vm5, %v65_v52, %v81_v62  ;;  %v86_v2 = vsel %vm74_vm5, %v68_v54, %v85_v63  ;;  %v162_v4 = vshrl.u32 %v355_v34, %v159_v53  ;;  %v79_v5 = vsel %vm73_vm3, %v76_v57, %v78_v61 }
  0x32   :  { %v83_v6 = vsel %vm73_vm3, %v80_v59, %v82_v1  ;;  %v87_v7 = vsel %vm73_vm3, %v84_v60, %v86_v2  ;;  %v165_v11 = vshrl.u32 %v356_v36, %v159_v53  ;;  %v167_v19 = vshll.u32 %v356_v36, %v158_v29 }
  0x33   :  { %v418_v13 = vmul.u32.u64.low %v405_v28, %v87_v7  ;;  %v419_v14 = vmul.u32.u64.high %v405_v28, %v87_v7, %v418_v13  ;;  %v422_v15 = vmul.u32.u64.low %v405_v28, %v83_v6  ;;  %v423_v16 = vmul.u32.u64.high %v405_v28, %v83_v6, %v422_v15 }
  0x34   :  { %v163_v17 = vor.u32 %v162_v4, %v161_v56  ;;  %v166_v18 = vor.u32 %v165_v11, %v164_v0  ;;  %v168_v20 = vshrl.u32 %v357_v38, %v159_v53  ;;  %v170_v21 = vshll.u32 %v357_v38, %v158_v29 }
  0x35   :  { %v171_v22 = vshrl.u32 %v358_v40, %v159_v53  ;;  %v173_v23 = vshll.u32 %v358_v40, %v158_v29  ;;  %v174_v24 = vshrl.u32 %v359_v48, %v159_v53  ;;  %v95_v25 = vmul.u32 %v405_v28, %v79_v5 }
  0x36   :  { %v169_v26 = vor.u32 %v168_v20, %v167_v19  ;;  %vm176_vm6 = vcmp.lt.s32.totalorder %v409_v42, 1  ;;  %vm177_vm7 = vcmp.lt.s32.totalorder %v409_v42, 2  ;;  %vm97_vm8 = vc.u32 %v419_v14, %v422_v15 }
  0x37   :  { %v98_v27 = vadd.s32 1, %v423_v16  ;;  %v172_v31 = vor.u32 %v171_v22, %v170_v21  ;;  %vm178_vm9 = vcmp.lt.s32.totalorder %v409_v42, 3  ;;  %v175_v32 = vor.u32 %v174_v24, %v173_v23 }
  0x38   :  { %vm179_vm10 = vcmp.lt.s32.totalorder %v409_v42, 4  ;;  %v180_v33 = vsel %vm176_vm6, %v160_v3, %v163_v17  ;;  %v184_v29 = vsel %vm176_vm6, %v163_v17, %v166_v18  ;;  %v188_v36 = vsel %vm176_vm6, %v166_v18, %v169_v26 }
  0x39   :  { %v99_v34 = vsel %vm97_vm8, %v98_v27, %v423_v16  ;;  %v181_v28 = vsel %vm179_vm10, %v169_v26, 2102212464  ;;  %v185_v35 = vsel %vm179_vm10, %v172_v31, 920167782  ;;  %v189_v40 = vsel %vm179_vm10, %v175_v32, 1326507024 }
  0x3a   :  { %v100_v37 = vadd.s32 %v99_v34, %v95_v25  ;;  %v182_v38 = vsel %vm178_vm9, %v166_v18, %v181_v28  ;;  %v186_v39 = vsel %vm178_vm9, %v169_v26, %v185_v35  ;;  %v190_v44 = vsel %vm178_vm9, %v172_v31, %v189_v40 }
  0x3b   :  { %v183_v41 = vsel %vm177_vm7, %v180_v33, %v182_v38  ;;  %v187_v43 = vsel %vm177_vm7, %v184_v29, %v186_v39  ;;  %v191_v46 = vsel %vm177_vm7, %v188_v36, %v190_v44  ;;  %v96_v1 = vadd.s32 %v422_v15, %v419_v14 }
  0x3c   :  { %v101_v45 = vadd.s32 536870912, %v100_v37  ;;  %v440_v47 = vmul.u32.u64.low %v407_v30, %v187_v43  ;;  %v441_v48 = vmul.u32.u64.high %v407_v30, %v187_v43, %v440_v47  ;;  %v199_v52 = vmul.u32 %v407_v30, %v183_v41 }
  0x3d   :  { %v444_v49 = vmul.u32.u64.low %v407_v30, %v191_v46  ;;  %v445_v50 = vmul.u32.u64.high %v407_v30, %v191_v46, %v444_v49  ;;  %vm132_vm5 = vweird.f32 %v393_v8  ;;  %vm236_vm9 = vweird.f32 %v395_v9 }
  0x3e   :  { %v102_v51 = vshrl.u32 %v101_v45, 30  ;;  %v202_v54 = vadd.s32 1, %v441_v48 }
  0x3f   :  { %vm201_vm11 = vc.u32 %v445_v50, %v440_v47  ;;  %v200_v21 = vadd.s32 %v440_v47, %v445_v50 }
  0x40   :  { %v103_v53 = vshll.u32 %v102_v51, 30  ;;  %v203_v42 = vsel %vm201_vm11, %v202_v54, %v441_v48  ;;  %v126_v14 = vsub.s32 4, %v102_v51 }
  0x41   :  { %v204_v56 = vadd.s32 %v203_v42, %v199_v52 }
  0x42   :  { %v104_v55 = vsub.s32 %v100_v37, %v103_v53  ;;  %v127_v33 = vsel %vm42_vm14, %v126_v14, %v102_v51 }
  0x43   :  { %v205_v58 = vadd.s32 536870912, %v204_v56  ;;  %v129_v36 = vsel %vm41_vm15, 0, %v127_v33 }
  0x44   :  { %v106_v57 = vsub.s32 0, %v104_v55  ;;  %v133_v41 = vadd.s32 3, %v129_v36 }
  0x45   :  { %v206_v60 = vshrl.u32 %v205_v58, 30 }
  0x46   :  { %v268_v59 = vmin.u32 %v106_v57, %v104_v55  ;;  %v134_v45 = vand.u32 3, %v133_v41 }
  0x47   :  { %v207_v62 = vshll.u32 %v206_v60, 30  ;;  %v230_v40 = vsub.s32 4, %v206_v60 }
  0x48   :  { %v108_v61 = vclz %v268_v59  ;;  %vm139_vm2 = vcmp.eq.s32.totalorder %v134_v45, 2  ;;  %vm136_vm3 = vcmp.eq.s32.totalorder %v134_v45, 0  ;;  %vm135_vm4 = vcmp.lt.s32.totalorder %v134_v45, 2 }
  0x49   :  { %v208_v0 = vsub.s32 %v204_v56, %v207_v62  ;;  %v231_v44 = vsel %vm146_vm0, %v230_v40, %v206_v60 }
  0x4a   :  { %v269_v63 = vadd.s32 4294967294, %v108_v61  ;;  %v233_v48 = vsel %vm145_vm1, 0, %v231_v44 }
  0x4b   :  { %v210_v2 = vsub.s32 0, %v208_v0  ;;  %v237_v52 = vadd.s32 3, %v233_v48 }
  0x4c   :  { %vm270_vm12 = vcmp.lt.s32.totalorder %v269_v63, 0 }
  0x4d   :  { %v111_v30 = vsel %vm270_vm12, 0, %v269_v63  ;;  %v272_v6 = vmin.u32 %v210_v2, %v208_v0  ;;  %v238_v42 = vand.u32 3, %v237_v52 }
  0x4e   :  { %v112_v3 = vsub.s32 32, %v111_v30  ;;  %v113_v4 = vshll.u32 %v104_v55, %v111_v30  ;;  %v116_v5 = vsub.s32 4294967266, %v111_v30 }
  0x4f   :  { %v212_v13 = vclz %v272_v6  ;;  %vm243_vm6 = vcmp.eq.s32.totalorder %v238_v42, 2  ;;  %vm240_vm7 = vcmp.eq.s32.totalorder %v238_v42, 0  ;;  %vm239_vm8 = vcmp.lt.s32.totalorder %v238_v42, 2 }
  0x50   :  { %v114_v7 = vshrl.u32 %v96_v1, %v112_v3  ;;  %v117_v11 = vadd.s32 127, %v116_v5 }
  0x51   :  { %v273_v18 = vadd.s32 4294967294, %v212_v13 }
  0x52   :  { %v115_v16 = vor.u32 %v114_v7, %v113_v4  ;;  %v118_v17 = vshll.u32 %v117_v11, 23 }
  0x53   :  { %vm274_vm13 = vcmp.lt.s32.totalorder %v273_v18, 0 }
  0x54   :  { %v119_v19 = vor.u32 4788187, %v118_v17  ;;  %v122_v20 = vcvt.s32.f32 %v115_v16  ;;  %v215_v15 = vsel %vm274_vm13, 0, %v273_v18 }
  0x55   :  { %v216_v23 = vsub.s32 32, %v215_v15  ;;  %v217_v24 = vshll.u32 %v208_v0, %v215_v15  ;;  %v220_v25 = vsub.s32 4294967266, %v215_v15 }
  0x56   :  { %v120_v22 = vand.u32 2147483647, %v119_v19 }
  0x57   :  { %v218_v27 = vshrl.u32 %v200_v21, %v216_v23  ;;  %v221_v31 = vadd.s32 127, %v220_v25 }
  0x58   :  { %v123_v26 = vmul.f32 %v122_v20, %v120_v22 }
  0x59   :  { %v219_v29 = vor.u32 %v218_v27, %v217_v24  ;;  %v222_v34 = vshll.u32 %v221_v31, 23 }
  0x5a   :  { %v124_v32 = vxor.u32 2147483648, %v123_v26 }
  0x5b   :  { %v223_v37 = vor.u32 4788187, %v222_v34  ;;  %v226_v38 = vcvt.s32.f32 %v219_v29 }
  0x5c   :  { %v125_v28 = vsel %vm42_vm14, %v124_v32, %v123_v26 }
  0x5d   :  { %v128_v35 = vsel %vm41_vm15, %v393_v8, %v125_v28  ;;  %v224_v39 = vand.u32 2147483647, %v223_v37 }
  0x5e   :  { %295 = vcosq.f32 %v128_v35 }
  0x5f   :  { %297 = vsinq.f32 %v128_v35  ;;  %v227_v43 = vmul.f32 %v226_v38, %v224_v39 }
  0x61   :  { %v228_v10 = vxor.u32 2147483648, %v227_v43 }
  0x63   :  { %v229_v46 = vsel %vm146_vm0, %v228_v10, %v227_v43 }
  0x64   :  { %v232_v47 = vsel %vm145_vm1, %v395_v9, %v229_v46 }
  0x65   :  { %299 = vcosq.f32 %v232_v47 }
  0x66   :  { %301 = vsinq.f32 %v232_v47 }
  0x68   :  { %v296_v49 = vpop.eup %295 }
  0x69   :  { %v298_v50 = vpop.eup %297  ;;  %v140_v51 = vxor.u32 2147483648, %v296_v49 }
  0x6a   :  { %v137_v53 = vxor.u32 2147483648, %v298_v50 }
  0x6b   :  { %v141_v12 = vsel %vm139_vm2, %v140_v51, %v298_v50 }
  0x6c   :  { %v138_v54 = vsel %vm136_vm3, %v296_v49, %v137_v53 }
  0x6d   :  { %v142_v55 = vsel %vm135_vm4, %v138_v54, %v141_v12 }
  0x6e   :  { %v143_v56 = vsel %vm132_vm5, nan, %v142_v55 }
  0x6f   :  { %248 = vst [vmem:[#allocation5] sm:$0xff] %v143_v56  ;;  %v300_v57 = vpop.eup %299 }
  0x70   :  { %v302_v58 = vpop.eup %301  ;;  %v244_v59 = vxor.u32 2147483648, %v300_v57 }
  0x71   :  { %v241_v60 = vxor.u32 2147483648, %v302_v58 }
  0x72   :  { %v245_v61 = vsel %vm243_vm6, %v244_v59, %v302_v58 }
  0x73   :  { %v242_v62 = vsel %vm240_vm7, %v300_v57, %v241_v60 }
  0x74   :  { %v246_v63 = vsel %vm239_vm8, %v242_v62, %v245_v61 }
  0x75   :  { %v247_v0 = vsel %vm236_vm9, nan, %v246_v63 }
  0x76   :  { %249 = vst [vmem:[#allocation5 + $0x8] sm:$0xff] %v247_v0 }
  0x77   :  { %254 = vsyncadd [#allocation4], 192  ;;  %s360_s0 = smov [#allocation5]  }
  0x78   :  { %s255_s1 = sshll.u32 %s360_s0, 4  ;;  %s256_s1 = int_to_ptr.vmem [resolvable:$true] %s255_s1 }
  0x79   :  { %s325_s25 = scalar_lea.vmem %s256_s1, 64  ;;  %s329_s26 = scalar_lea.vmem %s256_s1, 256 }
  0x7a   :  { %p326_p8 = scmp.ne.s32.totalorder %s256_s1, %s325_s25  ;;  %p330_p9 = scmp.lt.s32.totalorder %s256_s1, %s256_s1 }
  0x7b   :  { %p331_p10 = scmp.lt.s32.totalorder %s329_s26, %s325_s25 }
  0x7d   :  { %p332_p11 = por %p331_p10, %p330_p9 }
  0x7f   :  { %p333_p12 = pnand %p332_p11, %p326_p8 }
  0x81   :  { %336 = shalt.err (!%p333_p12)
}
  0x82   :  { %s337_s29 = scalar_lea.hbm %s477_s2, 64 }
  0x83   :  { %p338_p13 = scmp.ne.s32.totalorder %s477_s2, %s337_s29  ;;  %p341_p0 = scmp.lt.u32.totalorder %s337_s29, %s477_s2 }
  0x85   :  { %p343_p1 = pnand %p341_p0, %p338_p13 }
  0x87   :  { %346 = shalt.err (!%p343_p1)
}
  0x88   :  { %s361_s6 = smov 64   ;;  %s362_s7 = smov 4  }
  0x89   :  { %261 = dma.vmem_to_hbm [thread:$0]  %s256_s1, 64, %s477_s2, [#allocation4], %s361_s6, %s361_s6, %s362_s7  }
  0x8a   :  { %349 = dma.done.wait [#allocation4], 256  }
  0x8b   :  { %350 = vsyncadd [#allocation4], 4294967040 }
  0x8c   :  { %265 = vsyncpa [#allocation3], 1 }
  0x8d   :  { %266 = vsyncpa [#allocation4], 1 }

</bundles_post_ra>
